<compile_context>
chip_gen: v7x
topology: tpu7x:2x2x1
jax: 0.10.0
libtpu: 0.0.40
codegen_flags: <defaults>
</compile_context>

<pallas_src>
import jax
import jax.numpy as jnp
from jax.experimental import pallas as pl
from jax.experimental.pallas import tpu as pltpu


_VMEM_LIMIT_BYTES = 48 * 1024 * 1024  # safe on v5e/v6e (128 MiB) and v7x (64 MiB)


# ----------------------------------------------------------------------------
# Kernels
# ----------------------------------------------------------------------------
def _fused_gnn_kernel(adj_ref, x_ref, w1_ref, b1_ref, w2_ref, b2_ref, o_ref):
    """Both GCN layers fused; hidden activation never leaves VMEM.

    adj_ref is bf16; linear parts run in f32, the A@XW matmuls run bf16 x bf16
    with f32 accumulation (preferred_element_type).
    """
    adj = adj_ref[...]                                           # bf16 (n, n)
    # layer 1: relu( A @ (X @ W1 + b1) )
    xw1 = jnp.dot(x_ref[...], w1_ref[...], preferred_element_type=jnp.float32)
    xw1 = xw1 + b1_ref[...]                                      # (1, Dh) broadcast
    h = jnp.maximum(
        jnp.dot(adj, xw1.astype(jnp.bfloat16), preferred_element_type=jnp.float32),
        0.0,
    )
    # layer 2: relu( A @ (H @ W2 + b2) )
    xw2 = jnp.dot(h, w2_ref[...], preferred_element_type=jnp.float32)
    xw2 = xw2 + b2_ref[...]
    out = jnp.maximum(
        jnp.dot(adj, xw2.astype(jnp.bfloat16), preferred_element_type=jnp.float32),
        0.0,
    )
    o_ref[...] = out.astype(o_ref.dtype)


def _linear_kernel(x_ref, w_ref, b_ref, o_ref):
    """XW + b for one row tile; f32 compute, bf16 lane-dense output."""
    o_ref[...] = (
        jnp.dot(x_ref[...], w_ref[...], preferred_element_type=jnp.float32)
        + b_ref[...]
    ).astype(o_ref.dtype)


def _aggregate_kernel(adj_ref, xw_ref, o_ref, acc_ref):
    """relu( A @ XW ), adjacency (tm, tk)-tiled, xw fully VMEM-resident.

    xw_ref is the whole (n_pad, dout_pad) bf16 array (constant index_map ->
    DMA'd once); the k-tile is sliced in-kernel.
    """
    k = pl.program_id(1)
    tk = adj_ref.shape[1]

    @pl.when(k == 0)
    def _():
        acc_ref[...] = jnp.zeros_like(acc_ref)

    start = pl.multiple_of(k * tk, tk)
    acc_ref[...] += jnp.dot(
        adj_ref[...], xw_ref[pl.ds(start, tk), :],
        preferred_element_type=jnp.float32,
    )

    @pl.when(k == pl.num_programs(1) - 1)
    def _():
        o_ref[...] = jnp.maximum(acc_ref[...], 0.0).astype(o_ref.dtype)


# ----------------------------------------------------------------------------
# Pallas wrappers
# ----------------------------------------------------------------------------
def _fused_gnn(adj_p, x_p, w1_p, b1_p, w2_p, b2_p):
    n_pad = adj_p.shape[0]
    dout_pad = w2_p.shape[1]
    vmem = pl.BlockSpec(memory_space=pltpu.MemorySpace.VMEM)
    return pl.pallas_call(
        _fused_gnn_kernel,
        out_shape=jax.ShapeDtypeStruct((n_pad, dout_pad), jnp.float32),
        in_specs=[vmem] * 6,
        out_specs=vmem,
        compiler_params=pltpu.CompilerParams(vmem_limit_bytes=_VMEM_LIMIT_BYTES),
    )(adj_p, x_p, w1_p, b1_p, w2_p, b2_p)


def _gcn_layer_tiled(adj_p, x_p, w_p, b_p, *, tm, tk):
    """One GCN layer for large N: relu( A @ (X @ W + b) ), tiled over A."""
    n_pad = adj_p.shape[0]
    din_pad = w_p.shape[0]
    dout_pad = w_p.shape[1]

    # 1) XW + b computed ONCE per layer (hoisted out of the adjacency loop),
    #    row-tiled, bf16 lane-dense output (halves its HBM traffic and its
    #    VMEM residency in step 2).
    xw = pl.pallas_call(
        _linear_kernel,
        out_shape=jax.ShapeDtypeStruct((n_pad, dout_pad), jnp.bfloat16),
        grid=(n_pad // tm,),
        in_specs=[
            pl.BlockSpec((tm, din_pad), lambda i: (i, 0)),
            pl.BlockSpec((din_pad, dout_pad), lambda i: (0, 0)),
            pl.BlockSpec((1, dout_pad), lambda i: (0, 0)),
        ],
        out_specs=pl.BlockSpec((tm, dout_pad), lambda i: (i, 0)),
        compiler_params=pltpu.CompilerParams(
            dimension_semantics=("parallel",),
            vmem_limit_bytes=_VMEM_LIMIT_BYTES,
        ),
    )(x_p, w_p, b_p)

    # 2) relu( A @ XW ): (tm, tk) bf16 adjacency tiles streamed from HBM,
    #    xw fully VMEM-resident (constant index_map -> single DMA), reduction
    #    axis last, f32 VMEM accumulator, row axis parallel (megacore).
    return pl.pallas_call(
        _aggregate_kernel,
        out_shape=jax.ShapeDtypeStruct((n_pad, dout_pad), jnp.float32),
        grid=(n_pad // tm, n_pad // tk),
        in_specs=[
            pl.BlockSpec((tm, tk), lambda i, k: (i, k)),
            pl.BlockSpec((n_pad, dout_pad), lambda i, k: (0, 0)),  # resident
        ],
        out_specs=pl.BlockSpec((tm, dout_pad), lambda i, k: (i, 0)),
        scratch_shapes=[pltpu.VMEM((tm, dout_pad), jnp.float32)],
        compiler_params=pltpu.CompilerParams(
            dimension_semantics=("parallel", "arbitrary"),
            vmem_limit_bytes=_VMEM_LIMIT_BYTES,
        ),
    )(adj_p, xw)


# ----------------------------------------------------------------------------
# Plain-JAX glue (sparse -> dense normalized adjacency) + forward
# ----------------------------------------------------------------------------
def build_norm_adj(edge_index, num_nodes):
    """Add self-loops, symmetric degree normalization, dense A[dst, src] = norm."""
    row, col = edge_index[0], edge_index[1]  # row = source, col = target
    loop = jnp.arange(num_nodes, dtype=edge_index.dtype)
    row = jnp.concatenate([row, loop])
    col = jnp.concatenate([col, loop])
    deg = jnp.zeros((num_nodes,), jnp.float32).at[col].add(1.0)
    deg_inv_sqrt = deg ** -0.5  # deg >= 1 after self-loops
    norm = deg_inv_sqrt[row] * deg_inv_sqrt[col]
    adj = jnp.zeros((num_nodes, num_nodes), jnp.float32).at[col, row].add(norm)
    return adj


def _round_up(n, m):
    return ((n + m - 1) // m) * m


def _pick_tile(n_pad, want):
    t = min(want, n_pad)
    while n_pad % t != 0:
        t -= 128
    return max(t, 128)


def custom_gnn_forward(x, edge_index, params, *, fuse_threshold=1024,
                       tm=None, tk=None):
    """relu(conv2(relu(conv1(x, ei)), ei)) — matches the PyTorch CustomGNN."""
    n, din = x.shape
    dhid = params["w1"].shape[1]
    dout = params["w2"].shape[1]

    # Lane/sublane-dense padding: N and all feature dims -> multiples of 128.
    # Zero padding is exact here (padded adjacency rows/cols are zero).
    n_pad = _round_up(max(n, 1), 128)
    din_pad = _round_up(din, 128)
    dhid_pad = _round_up(dhid, 128)
    dout_pad = _round_up(dout, 128)

    adj = build_norm_adj(edge_index, n)
    # bf16 adjacency: halves the dominant O(N^2) HBM traffic; accumulation in
    # the kernels stays f32 so the result easily meets 1e-2 tolerances.
    adj_p = (
        jnp.zeros((n_pad, n_pad), jnp.bfloat16)
        .at[:n, :n].set(adj.astype(jnp.bfloat16))
    )
    x_p = jnp.zeros((n_pad, din_pad), jnp.float32).at[:n, :din].set(x)
    w1_p = jnp.zeros((din_pad, dhid_pad), jnp.float32).at[:din, :dhid].set(params["w1"])
    b1_p = jnp.zeros((1, dhid_pad), jnp.float32).at[0, :dhid].set(params["b1"])
    w2_p = jnp.zeros((dhid_pad, dout_pad), jnp.float32).at[:dhid, :dout].set(params["w2"])
    b2_p = jnp.zeros((1, dout_pad), jnp.float32).at[0, :dout].set(params["b2"])

    if n_pad <= fuse_threshold:
        # Small/medium graphs: one fused kernel, everything resident in VMEM,
        # hidden activation never touches HBM.
        out_p = _fused_gnn(adj_p, x_p, w1_p, b1_p, w2_p, b2_p)
    else:
        # Large graphs: tiled adjacency reduction per layer; row axis shards
        # across TensorCores on v7x.
        tm_ = _pick_tile(n_pad, tm if tm is not None else 1024)
        tk_ = _pick_tile(n_pad, tk if tk is not None else 512)
        h_p = _gcn_layer_tiled(adj_p, x_p, w1_p, b1_p, tm=tm_, tk=tk_)
        out_p = _gcn_layer_tiled(adj_p, h_p, w2_p, b2_p, tm=tm_, tk=tk_)

    return out_p[:n, :dout]


def gnn_reference(x, edge_index, params):
    """Pure-JAX reference (high precision) for correctness checking."""
    hp = jax.lax.Precision.HIGHEST
    adj = build_norm_adj(edge_index, x.shape[0])
    h = jnp.maximum(
        jnp.dot(adj, jnp.dot(x, params["w1"], precision=hp) + params["b1"], precision=hp),
        0.0,
    )
    out = jnp.maximum(
        jnp.dot(adj, jnp.dot(h, params["w2"], precision=hp) + params["b2"], precision=hp),
        0.0,
    )
    return out


def init_params(key, input_dim, hidden_dim, output_dim):
    """PyTorch-style Linear init: uniform(-1/sqrt(fan_in), 1/sqrt(fan_in))."""
    k1, k2, k3, k4 = jax.random.split(key, 4)
    lim1 = 1.0 / jnp.sqrt(input_dim)
    lim2 = 1.0 / jnp.sqrt(hidden_dim)
    return {
        "w1": jax.random.uniform(k1, (input_dim, hidden_dim), jnp.float32, -lim1, lim1),
        "b1": jax.random.uniform(k2, (hidden_dim,), jnp.float32, -lim1, lim1),
        "w2": jax.random.uniform(k3, (hidden_dim, output_dim), jnp.float32, -lim2, lim2),
        "b2": jax.random.uniform(k4, (output_dim,), jnp.float32, -lim2, lim2),
    }


if __name__ == "__main__":
    key = jax.random.PRNGKey(0)
    k_x, k_e, k_p, k_x2, k_e2 = jax.random.split(key, 5)

    input_dim, hidden_dim, output_dim = 8, 32, 16
    params = init_params(k_p, input_dim, hidden_dim, output_dim)

    # --- small graph: fused single-kernel path --------------------------------
    num_nodes, num_edges = 16, 32
    x = jax.random.normal(k_x, (num_nodes, input_dim), jnp.float32)
    edge_index = jax.random.randint(k_e, (2, num_edges), 0, num_nodes, jnp.int32)

    out = custom_gnn_forward(x, edge_index, params)
    jax.block_until_ready(out)
    assert out.shape == (num_nodes, output_dim)
    ref = gnn_reference(x, edge_index, params)
    assert bool(jnp.allclose(out, ref, atol=1e-2, rtol=1e-2)), "fused path mismatch"

    # --- medium graph: exercise the tiled (grid) path -------------------------
    num_nodes2, num_edges2 = 200, 600       # pads to N=256 -> 2x2 grid at tile=128
    x2 = jax.random.normal(k_x2, (num_nodes2, input_dim), jnp.float32)
    edge_index2 = jax.random.randint(k_e2, (2, num_edges2), 0, num_nodes2, jnp.int32)

    out2 = custom_gnn_forward(x2, edge_index2, params, fuse_threshold=0, tm=128, tk=128)
    jax.block_until_ready(out2)
    assert out2.shape == (num_nodes2, output_dim)
    ref2 = gnn_reference(x2, edge_index2, params)
    assert bool(jnp.allclose(out2, ref2, atol=1e-2, rtol=1e-2)), "tiled path mismatch"

    print("KERNEL_OK")
</pallas_src>

<mosaic_0001>
module attributes {stable_mosaic.version = 11 : i64} {
  func.func @_fused_gnn_kernel(%arg0: memref<128x128xbf16, #tpu.memory_space<vmem>>, %arg1: memref<128x128xf32, #tpu.memory_space<vmem>>, %arg2: memref<128x128xf32, #tpu.memory_space<vmem>>, %arg3: memref<1x128xf32, #tpu.memory_space<vmem>>, %arg4: memref<128x128xf32, #tpu.memory_space<vmem>>, %arg5: memref<1x128xf32, #tpu.memory_space<vmem>>, %arg6: memref<128x128xf32, #tpu.memory_space<vmem>>) attributes {dimension_semantics = [], scalar_prefetch = 0 : i64, scratch_operands = 0 : i64, tpu.core_type = #tpu.core_type<tc>} {
    %c0 = arith.constant 0 : index
    %c0_0 = arith.constant 0 : index
    %0 = vector.load %arg0[%c0, %c0_0] : memref<128x128xbf16, #tpu.memory_space<vmem>>, vector<128x128xbf16>
    %c0_1 = arith.constant 0 : index
    %c0_2 = arith.constant 0 : index
    %1 = vector.load %arg1[%c0_1, %c0_2] : memref<128x128xf32, #tpu.memory_space<vmem>>, vector<128x128xf32>
    %c0_3 = arith.constant 0 : index
    %c0_4 = arith.constant 0 : index
    %2 = vector.load %arg2[%c0_3, %c0_4] : memref<128x128xf32, #tpu.memory_space<vmem>>, vector<128x128xf32>
    %cst = arith.constant dense<0.000000e+00> : vector<128x128xf32>
    %3 = tpu.matmul %1, %2, %cst {dimension_numbers = #tpu.dot_dimension_numbers<[1], [0], [0], [1], [0, 0, 1, 1], [], []>} : vector<128x128xf32>, vector<128x128xf32>, vector<128x128xf32> -> vector<128x128xf32>
    %c0_5 = arith.constant 0 : index
    %c0_6 = arith.constant 0 : index
    %4 = vector.load %arg3[%c0_5, %c0_6] : memref<1x128xf32, #tpu.memory_space<vmem>>, vector<1x128xf32>
    %5 = vector.broadcast %4 : vector<1x128xf32> to vector<128x128xf32>
    %6 = arith.addf %3, %5 : vector<128x128xf32>
    %7 = arith.truncf %6 : vector<128x128xf32> to vector<128x128xbf16>
    %cst_7 = arith.constant dense<0.000000e+00> : vector<128x128xf32>
    %8 = tpu.matmul %0, %7, %cst_7 {dimension_numbers = #tpu.dot_dimension_numbers<[1], [0], [0], [1], [0, 0, 1, 1], [], []>} : vector<128x128xbf16>, vector<128x128xbf16>, vector<128x128xf32> -> vector<128x128xf32>
    %cst_8 = arith.constant 0.000000e+00 : f32
    %9 = vector.broadcast %cst_8 : f32 to vector<128x128xf32>
    %10 = arith.maximumf %8, %9 : vector<128x128xf32>
    %c0_9 = arith.constant 0 : index
    %c0_10 = arith.constant 0 : index
    %11 = vector.load %arg4[%c0_9, %c0_10] : memref<128x128xf32, #tpu.memory_space<vmem>>, vector<128x128xf32>
    %cst_11 = arith.constant dense<0.000000e+00> : vector<128x128xf32>
    %12 = tpu.matmul %10, %11, %cst_11 {dimension_numbers = #tpu.dot_dimension_numbers<[1], [0], [0], [1], [0, 0, 1, 1], [], []>} : vector<128x128xf32>, vector<128x128xf32>, vector<128x128xf32> -> vector<128x128xf32>
    %c0_12 = arith.constant 0 : index
    %c0_13 = arith.constant 0 : index
    %13 = vector.load %arg5[%c0_12, %c0_13] : memref<1x128xf32, #tpu.memory_space<vmem>>, vector<1x128xf32>
    %14 = vector.broadcast %13 : vector<1x128xf32> to vector<128x128xf32>
    %15 = arith.addf %12, %14 : vector<128x128xf32>
    %16 = arith.truncf %15 : vector<128x128xf32> to vector<128x128xbf16>
    %cst_14 = arith.constant dense<0.000000e+00> : vector<128x128xf32>
    %17 = tpu.matmul %0, %16, %cst_14 {dimension_numbers = #tpu.dot_dimension_numbers<[1], [0], [0], [1], [0, 0, 1, 1], [], []>} : vector<128x128xbf16>, vector<128x128xbf16>, vector<128x128xf32> -> vector<128x128xf32>
    %cst_15 = arith.constant 0.000000e+00 : f32
    %18 = vector.broadcast %cst_15 : f32 to vector<128x128xf32>
    %19 = arith.maximumf %17, %18 : vector<128x128xf32>
    %c0_16 = arith.constant 0 : index
    %c0_17 = arith.constant 0 : index
    %20 = vector.load %arg6[%c0_16, %c0_17] : memref<128x128xf32, #tpu.memory_space<vmem>>, vector<128x128xf32>
    tpu.vector_store %arg6[%c0_16, %c0_17], %19 {strides = array<i32>} : memref<128x128xf32, #tpu.memory_space<vmem>>, vector<128x128xf32>,
    return
  }
}

</mosaic_0001>

<bundles_post_ra>
// kernel: tpu_custom_call.1
= control target key start
LH: loop header
LB: loop body
LE: loop exit
PB: predicated region body
PF: predicated region fallthrough
CT: control target
= control target key end

     0   :  { %11 = vsyncpa [#allocation3], 0  ;;  %s1415_s0 = inlined_call_operand.hbm [shape: bf16[128,128], index: 0, kind: input, shape index: {}]   ;;  %s1416_s1 = inlined_call_operand.hbm [shape: f32[128,128], index: 1, kind: input, shape index: {}]   ;;  %s1417_s2 = inlined_call_operand.hbm [shape: f32[128,128], index: 2, kind: input, shape index: {}]   ;;  %s1418_s3 = inlined_call_operand.vmem [shape: f32[1,128], index: 3, kind: input, shape index: {}]   ;;  %s1419_s4 = inlined_call_operand.hbm [shape: f32[128,128], index: 4, kind: input, shape index: {}]   ;;  %s1420_s5 = inlined_call_operand.vmem [shape: f32[1,128], index: 5, kind: input, shape index: {}]   ;;  %s1421_s6 = inlined_call_operand.hbm [shape: f32[128,128], index: 6, kind: output, shape index: {}]  }
   0x1   :  { %12 = vsyncpa [#allocation6], 0 }
   0x2   :  { %13 = vsyncpa [#allocation9], 0 }
   0x3   :  { %14 = vsyncpa [#allocation4], 0  ;;  %s1254_s21 = smov [#allocation5]   ;;  %s1136_s25 = scalar_lea.hbm %s1416_s1, 2048 }
   0x4   :  { %s32_s22 = sshll.u32 %s1254_s21, 4  ;;  %p1137_p0 = scmp.ne.s32.totalorder %s1416_s1, %s1136_s25  ;;  %s33_s22 = int_to_ptr.vmem [resolvable:$true] %s32_s22 }
   0x5   :  { %p1140_p1 = scmp.lt.u32.totalorder %s1136_s25, %s1416_s1 }
   0x7   :  { %p1142_p2 = pnand %p1140_p1, %p1137_p0 }
   0x9   :  { %1145 = shalt.err (!%p1142_p2)
}
   0xa   :  { %s1146_s30 = scalar_lea.vmem %s33_s22, 2048  ;;  %p1151_p4 = scmp.lt.s32.totalorder %s33_s22, %s33_s22 }
   0xb   :  { %p1147_p3 = scmp.ne.s32.totalorder %s33_s22, %s1146_s30  ;;  %p1152_p5 = scmp.lt.s32.totalorder %s1146_s30, %s1146_s30 }
   0xd   :  { %p1153_p6 = por %p1152_p5, %p1151_p4 }
   0xf   :  { %p1154_p7 = pnand %p1153_p6, %p1147_p3 }
  0x11   :  { %1157 = shalt.err (!%p1154_p7)
}
  0x12   :  { %s1255_s7 = smov 128   ;;  %s1256_s8 = smov 8  }
  0x13   :  { %38 = dma.hbm_to_vmem [thread:$0]  %s1416_s1, 2048, %s33_s22, [#allocation6], %s1255_s7, %s1255_s7, %s1256_s8  }
  0x14   :  { %s1257_s11 = smov [#allocation2]   ;;  %s1158_s15 = scalar_lea.hbm %s1415_s0, 1024 }
  0x15   :  { %s20_s12 = sshll.u32 %s1257_s11, 4  ;;  %p1159_p8 = scmp.ne.s32.totalorder %s1415_s0, %s1158_s15  ;;  %s21_s12 = int_to_ptr.vmem [resolvable:$true] %s20_s12 }
  0x16   :  { %p1162_p9 = scmp.lt.u32.totalorder %s1158_s15, %s1415_s0 }
  0x18   :  { %p1164_p10 = pnand %p1162_p9, %p1159_p8 }
  0x1a   :  { %1167 = shalt.err (!%p1164_p10)
}
  0x1b   :  { %s1168_s20 = scalar_lea.vmem %s21_s12, 1024  ;;  %p1173_p12 = scmp.lt.s32.totalorder %s21_s12, %s21_s12 }
  0x1c   :  { %p1169_p11 = scmp.ne.s32.totalorder %s21_s12, %s1168_s20  ;;  %p1174_p13 = scmp.lt.s32.totalorder %s1168_s20, %s1168_s20 }
  0x1e   :  { %p1175_p0 = por %p1174_p13, %p1173_p12 }
  0x20   :  { %p1176_p1 = pnand %p1175_p0, %p1169_p11 }
  0x22   :  { %1179 = shalt.err (!%p1176_p1)
}
  0x23   :  { %s1258_s1 = smov 64   ;;  %s1259_s21 = smov 4  }
  0x24   :  { %26 = dma.hbm_to_vmem [thread:$0]  %s1415_s0, 1024, %s21_s12, [#allocation3], %s1258_s1, %s1258_s1, %s1259_s21  }
  0x25   :  { %s1260_s24 = smov [#allocation7]   ;;  %s1261_s26 = smov [#allocation8]  }
  0x26   :  { %s44_s25 = sshll.u32 %s1260_s24, 4  ;;  %s58_s27 = sshll.u32 %s1261_s26, 4  ;;  %s45_s25 = int_to_ptr.vmem [resolvable:$true] %s44_s25  ;;  %s1325_s27 = int_to_ptr.vmem [resolvable:$true] %s58_s27 }
  0x27   :  { %s1180_s30 = scalar_lea.hbm %s1417_s2, 2048 }
  0x28   :  { %p1181_p2 = scmp.ne.s32.totalorder %s1417_s2, %s1180_s30  ;;  %p1184_p3 = scmp.lt.u32.totalorder %s1180_s30, %s1417_s2 }
  0x2a   :  { %p1186_p4 = pnand %p1184_p3, %p1181_p2 }
  0x2c   :  { %1189 = shalt.err (!%p1186_p4)
}
  0x2d   :  { %s1190_s0 = scalar_lea.vmem %s45_s25, 2048  ;;  %p1195_p6 = scmp.lt.s32.totalorder %s45_s25, %s45_s25 }
  0x2e   :  { %p1191_p5 = scmp.ne.s32.totalorder %s45_s25, %s1190_s0  ;;  %p1196_p7 = scmp.lt.s32.totalorder %s1190_s0, %s1190_s0 }
  0x30   :  { %p1197_p8 = por %p1196_p7, %p1195_p6 }
  0x32   :  { %p1198_p9 = pnand %p1197_p8, %p1191_p5 }
  0x34   :  { %1201 = shalt.err (!%p1198_p9)
}
  0x35   :  { %50 = dma.hbm_to_vmem [thread:$0]  %s1417_s2, 2048, %s45_s25, [#allocation6], %s1255_s7, %s1255_s7, %s1256_s8  }
  0x36   :  { %s1202_s17 = scalar_lea.hbm %s1419_s4, 2048 }
  0x37   :  { %p1203_p10 = scmp.ne.s32.totalorder %s1419_s4, %s1202_s17  ;;  %p1206_p11 = scmp.lt.u32.totalorder %s1202_s17, %s1419_s4 }
  0x39   :  { %p1208_p12 = pnand %p1206_p11, %p1203_p10 }
  0x3b   :  { %1211 = shalt.err (!%p1208_p12)
}
  0x3c   :  { %s1212_s21 = scalar_lea.vmem %s1325_s27, 2048  ;;  %p1217_p0 = scmp.lt.s32.totalorder %s1325_s27, %s1325_s27 }
  0x3d   :  { %p1213_p13 = scmp.ne.s32.totalorder %s1325_s27, %s1212_s21  ;;  %p1218_p1 = scmp.lt.s32.totalorder %s1212_s21, %s1212_s21 }
  0x3f   :  { %p1219_p2 = por %p1218_p1, %p1217_p0 }
  0x41   :  { %p1220_p3 = pnand %p1219_p2, %p1213_p13 }
  0x43   :  { %1223 = shalt.err (!%p1220_p3)
}
  0x44   :  { %64 = dma.hbm_to_vmem [thread:$0]  %s1419_s4, 2048, %s1325_s27, [#allocation9], %s1255_s7, %s1255_s7, %s1256_s8  }
  0x45   :  { %1246 = dma.done.wait [#allocation3], 1024  }
  0x46   :  { %1247 = vsyncadd [#allocation3], 4294966272 }
  0x47   :  { %1248 = dma.done.wait [#allocation6], 4096  }
  0x48   :  { %1249 = vsyncadd [#allocation6], 4294963200 }
  0x49   :  { %1250 = dma.done.wait [#allocation9], 2048  }
  0x4a   :  { %1251 = vsyncadd [#allocation9], 4294965248  ;;  %v112_v0 = vld [vmem:[#allocation7] sm:$0xff]  ;;  %v113_v1 = vld [vmem:[#allocation7 + $0x8] sm:$0xff] }
  0x4b   :  { %v114_v2 = vld [vmem:[#allocation7 + $0x10] sm:$0xff]  ;;  %v1055_v3 = vpack.c.bf16 %v113_v1, %v112_v0  ;;  %v115_v4 = vld [vmem:[#allocation7 + $0x18] sm:$0xff]  ;;  %v116_v6 = vld [vmem:[#allocation7 + $0x20] sm:$0xff] }
  0x4c   :  { %v1059_v5 = vpack.c.bf16 %v115_v4, %v114_v2  ;;  %v117_v7 = vld [vmem:[#allocation7 + $0x28] sm:$0xff]  ;;  %v96_v9 = vld [vmem:[#allocation5] sm:$0xff]  ;;  %v118_v10 = vld [vmem:[#allocation7 + $0x30] sm:$0xff] }
  0x4d   :  { %1056 = vmatprep.subr.bf16.mxu0 %v1055_v3  ;;  %v1063_v8 = vpack.c.bf16 %v117_v7, %v116_v6  ;;  %v119_v11 = vld [vmem:[#allocation7 + $0x38] sm:$0xff]  ;;  %911 = vmatprep.mubr.f32.mxu0 %v96_v9  ;;  %v120_v13 = vld [vmem:[#allocation7 + $0x40] sm:$0xff]  ;;  %v121_v14 = vld [vmem:[#allocation7 + $0x48] sm:$0xff] }
  0x4e   :  { %1058 = vmatpush3.bf16.msra.mxu0 %v1055_v3  ;;  %v1067_v12 = vpack.c.bf16 %v119_v11, %v118_v10  ;;  %v122_v15 = vld [vmem:[#allocation7 + $0x50] sm:$0xff]  ;;  %v123_v16 = vld [vmem:[#allocation7 + $0x58] sm:$0xff]  ;;  %v1071_v17 = vpack.c.bf16 %v121_v14, %v120_v13  ;;  %v124_v19 = vld [vmem:[#allocation7 + $0x60] sm:$0xff] }
  0x4f   :  { %1060 = vmatprep.subr.bf16.mxu0 %v1059_v5  ;;  %v1075_v18 = vpack.c.bf16 %v123_v16, %v122_v15  ;;  %v125_v20 = vld [vmem:[#allocation7 + $0x68] sm:$0xff]  ;;  %v126_v22 = vld [vmem:[#allocation7 + $0x70] sm:$0xff]  ;;  %v127_v23 = vld [vmem:[#allocation7 + $0x78] sm:$0xff] }
  0x50   :  { %v1079_v21 = vpack.c.bf16 %v125_v20, %v124_v19  ;;  %v1083_v24 = vpack.c.bf16 %v127_v23, %v126_v22  ;;  %v97_v25 = vld [vmem:[#allocation5 + $0x8] sm:$0xff]  ;;  %v98_v26 = vld [vmem:[#allocation5 + $0x10] sm:$0xff]  ;;  %v99_v27 = vld [vmem:[#allocation5 + $0x18] sm:$0xff] }
  0x51   :  { %v100_v28 = vld [vmem:[#allocation5 + $0x20] sm:$0xff]  ;;  %v101_v29 = vld [vmem:[#allocation5 + $0x28] sm:$0xff]  ;;  %v102_v30 = vld [vmem:[#allocation5 + $0x30] sm:$0xff] }
  0x52   :  { %1062 = vmatpush3.bf16.msra.mxu0 %v1059_v5  ;;  %v103_v31 = vld [vmem:[#allocation5 + $0x38] sm:$0xff]  ;;  %v104_v32 = vld [vmem:[#allocation5 + $0x40] sm:$0xff]  ;;  %v105_v33 = vld [vmem:[#allocation5 + $0x48] sm:$0xff] }
  0x53   :  { %1064 = vmatprep.subr.bf16.mxu0 %v1063_v8  ;;  %v106_v34 = vld [vmem:[#allocation5 + $0x50] sm:$0xff]  ;;  %v107_v35 = vld [vmem:[#allocation5 + $0x58] sm:$0xff]  ;;  %v108_v36 = vld [vmem:[#allocation5 + $0x60] sm:$0xff] }
  0x54   :  { %v109_v37 = vld [vmem:[#allocation5 + $0x68] sm:$0xff]  ;;  %v110_v38 = vld [vmem:[#allocation5 + $0x70] sm:$0xff]  ;;  %v111_v39 = vld [vmem:[#allocation5 + $0x78] sm:$0xff] }
  0x55   :  { %v1362_v40 = vld [vmem:[#allocation2] sm:$0xff]   ;;  %v450_v42 = vld [vmem:[#allocation8 + $0x8] sm:$0xff]  ;;  %v451_v43 = vld [vmem:[#allocation8 + $0x10] sm:$0xff] }
  0x56   :  { %1066 = vmatpush3.bf16.msra.mxu0 %v1063_v8  ;;  %951 = vmatprep.mubr.bf16.mxu1 %v1362_v40  ;;  %v449_v41 = vld [vmem:[#allocation8] sm:$0xff]  ;;  %v452_v45 = vld [vmem:[#allocation8 + $0x18] sm:$0xff]  ;;  %v454_v48 = vld [vmem:[#allocation8 + $0x28] sm:$0xff] }
  0x57   :  { %1068 = vmatprep.subr.bf16.mxu0 %v1067_v12  ;;  %v1087_v44 = vpack.c.bf16 %v450_v42, %v449_v41  ;;  %v1091_v46 = vpack.c.bf16 %v452_v45, %v451_v43  ;;  %v453_v47 = vld [vmem:[#allocation8 + $0x20] sm:$0xff]  ;;  %v455_v50 = vld [vmem:[#allocation8 + $0x30] sm:$0xff]  ;;  %v456_v51 = vld [vmem:[#allocation8 + $0x38] sm:$0xff] }
  0x58   :  { %v1095_v49 = vpack.c.bf16 %v454_v48, %v453_v47  ;;  %v1099_v52 = vpack.c.bf16 %v456_v51, %v455_v50  ;;  %v457_v53 = vld [vmem:[#allocation8 + $0x40] sm:$0xff]  ;;  %v458_v54 = vld [vmem:[#allocation8 + $0x48] sm:$0xff]  ;;  %v459_v56 = vld [vmem:[#allocation8 + $0x50] sm:$0xff] }
  0x59   :  { %v1103_v55 = vpack.c.bf16 %v458_v54, %v457_v53  ;;  %v460_v57 = vld [vmem:[#allocation8 + $0x58] sm:$0xff]  ;;  %v461_v59 = vld [vmem:[#allocation8 + $0x60] sm:$0xff]  ;;  %v462_v60 = vld [vmem:[#allocation8 + $0x68] sm:$0xff] }
  0x5a   :  { %1070 = vmatpush3.bf16.msra.mxu0 %v1067_v12  ;;  %v1107_v58 = vpack.c.bf16 %v460_v57, %v459_v56  ;;  %v1111_v61 = vpack.c.bf16 %v462_v60, %v461_v59  ;;  %v773_v62 = vld [vmem:[%s1418_s3] ss:$0 sm:$0xff]  ;;  %v1370_v41 = vld [vmem:[#allocation2 + $0x10] sm:$0xff]   ;;  %v1374_v42 = vld [vmem:[#allocation2 + $0x18] sm:$0xff]  }
  0x5b   :  { %1072 = vmatprep.subr.bf16.mxu0 %v1071_v17  ;;  %v1376_v43 = vld [vmem:[#allocation2 + $0x20] sm:$0xff]   ;;  %v1382_v45 = vld [vmem:[#allocation2 + $0x30] sm:$0xff]   ;;  %v464_v48 = vld [vmem:[#allocation8 + $0x78] sm:$0xff] }
  0x5c   :  { %v463_v47 = vld [vmem:[#allocation8 + $0x70] sm:$0xff] }
  0x5e   :  { %1074 = vmatpush3.bf16.msra.mxu0 %v1071_v17 }
  0x5f   :  { %1076 = vmatprep.subr.bf16.mxu0 %v1075_v18 }
  0x62   :  { %1078 = vmatpush3.bf16.msra.mxu0 %v1075_v18 }
  0x63   :  { %1080 = vmatprep.subr.bf16.mxu0 %v1079_v21 }
  0x66   :  { %1082 = vmatpush3.bf16.msra.mxu0 %v1079_v21 }
  0x67   :  { %1084 = vmatprep.subr.bf16.mxu0 %v1083_v24 }
  0x6a   :  { %1086 = vmatpush3.bf16.msra.mxu0 %v1083_v24 }
  0x6b   :  { %1088 = vmatprep.subr.bf16.mxu0 %v1087_v44 }
  0x6d   :  { %912 = vmatmul.mubr.f32.vlgmr.msra.gmra.mrb[0].mxu0 %v97_v25 }
  0x6e   :  { %914 = vmatprep.mubr.f32.mxu0 %v98_v26  ;;  %1090 = vmatpush3.bf16.msra.mxu0 %v1087_v44  ;;  %v1380_v44 = vld [vmem:[#allocation2 + $0x28] sm:$0xff]  }
  0x6f   :  { %1092 = vmatprep.subr.bf16.mxu0 %v1091_v46 }
  0x71   :  { %915 = vmatmul.mubr.f32.gmra.mrb[2].mxu0 %v99_v27 }
  0x72   :  { %917 = vmatprep.mubr.f32.mxu0 %v100_v28  ;;  %1094 = vmatpush3.bf16.msra.mxu0 %v1091_v46  ;;  %v1386_v46 = vld [vmem:[#allocation2 + $0x38] sm:$0xff]  }
  0x73   :  { %1096 = vmatprep.subr.bf16.mxu0 %v1095_v49 }
  0x75   :  { %918 = vmatmul.mubr.f32.gmra.mrb[4].mxu0 %v101_v29 }
  0x76   :  { %920 = vmatprep.mubr.f32.mxu0 %v102_v30  ;;  %1098 = vmatpush3.bf16.msra.mxu0 %v1095_v49  ;;  %v1115_v49 = vpack.c.bf16 %v464_v48, %v463_v47 }
  0x77   :  { %1100 = vmatprep.subr.bf16.mxu0 %v1099_v52 }
  0x79   :  { %921 = vmatmul.mubr.f32.gmra.mrb[6].mxu0 %v103_v31 }
  0x7a   :  { %923 = vmatprep.mubr.f32.mxu0 %v104_v32  ;;  %1102 = vmatpush3.bf16.msra.mxu0 %v1099_v52 }
  0x7b   :  { %1104 = vmatprep.subr.bf16.mxu0 %v1103_v55 }
  0x7d   :  { %924 = vmatmul.mubr.f32.gmra.mrb[8].mxu0 %v105_v33 }
  0x7e   :  { %926 = vmatprep.mubr.f32.mxu0 %v106_v34  ;;  %1106 = vmatpush3.bf16.msra.mxu0 %v1103_v55 }
  0x7f   :  { %1108 = vmatprep.subr.bf16.mxu0 %v1107_v58 }
  0x81   :  { %927 = vmatmul.mubr.f32.gmra.mrb[10].mxu0 %v107_v35 }
  0x82   :  { %929 = vmatprep.mubr.f32.mxu0 %v108_v36  ;;  %1110 = vmatpush3.bf16.msra.mxu0 %v1107_v58 }
  0x83   :  { %1112 = vmatprep.subr.bf16.mxu0 %v1111_v61 }
  0x85   :  { %930 = vmatmul.mubr.f32.gmra.mrb[12].mxu0 %v109_v37 }
  0x86   :  { %932 = vmatprep.mubr.f32.mxu0 %v110_v38  ;;  %1114 = vmatpush3.bf16.msra.mxu0 %v1111_v61 }
  0x87   :  { %1116 = vmatprep.subr.bf16.mxu0 %v1115_v49 }
  0x89   :  { %933 = vmatmul.mubr.f32.gmra.mrb[14].mxu0 %v111_v39  ;;  %v1368_v39 = vld [vmem:[#allocation2 + $0x8] sm:$0xff]  }
  0x8a   :  { %1118 = vmatpush3.bf16.msra.mxu0 %v1115_v49 }
 0x140   :  { %v913_v63 = vpop.f32.mrb[0].mxu0 }
 0x141   :  { %v207_v0 = vadd.f32 %v913_v63, %v773_v62  ;;  %v201_v1 = vpop.f32.mrb[1].mxu0 }
 0x142   :  { %v202_v2 = vadd.f32 %v773_v62, %v201_v1 }
 0x144   :  { %v916_v3 = vpop.f32.mrb[2].mxu0  ;;  %v280_v4 = vpack.c.bf16 %v207_v0, %v202_v2 }
 0x145   :  { %v217_v5 = vadd.f32 %v916_v3, %v773_v62  ;;  %v211_v6 = vpop.f32.mrb[3].mxu0 }
 0x146   :  { %v212_v7 = vadd.f32 %v773_v62, %v211_v6  ;;  %935 = vmatprep.subr.bf16.mxu1 %v280_v4 }
 0x147   :  { %936 = vmatpush3.bf16.msra.mxu1 %v280_v4 }
 0x148   :  { %v281_v8 = vpack.c.bf16 %v217_v5, %v212_v7  ;;  %v919_v9 = vpop.f32.mrb[4].mxu0 }
 0x149   :  { %v227_v10 = vadd.f32 %v919_v9, %v773_v62  ;;  %v221_v11 = vpop.f32.mrb[5].mxu0 }
 0x14a   :  { %v222_v12 = vadd.f32 %v773_v62, %v221_v11  ;;  %937 = vmatprep.subr.bf16.mxu1 %v281_v8 }
 0x14b   :  { %938 = vmatpush3.bf16.msra.mxu1 %v281_v8 }
 0x14c   :  { %v282_v13 = vpack.c.bf16 %v227_v10, %v222_v12  ;;  %v922_v14 = vpop.f32.mrb[6].mxu0 }
 0x14d   :  { %v237_v15 = vadd.f32 %v922_v14, %v773_v62  ;;  %v231_v16 = vpop.f32.mrb[7].mxu0 }
 0x14e   :  { %v232_v17 = vadd.f32 %v773_v62, %v231_v16  ;;  %939 = vmatprep.subr.bf16.mxu1 %v282_v13 }
 0x14f   :  { %940 = vmatpush3.bf16.msra.mxu1 %v282_v13 }
 0x150   :  { %v283_v18 = vpack.c.bf16 %v237_v15, %v232_v17  ;;  %v925_v19 = vpop.f32.mrb[8].mxu0  ;;  %v782_v17 = vld [vmem:[%s1420_s5] ss:$0 sm:$0xff]  ;;  %s1262_s5 = smov [#allocation10]  }
 0x151   :  { %v247_v20 = vadd.f32 %v925_v19, %v773_v62  ;;  %v241_v21 = vpop.f32.mrb[9].mxu0  ;;  %s759_s25 = sshll.u32 %s1262_s5, 4  ;;  %s760_s25 = int_to_ptr.vmem [resolvable:$true] %s759_s25 }
 0x152   :  { %v242_v22 = vadd.f32 %v773_v62, %v241_v21  ;;  %941 = vmatprep.subr.bf16.mxu1 %v283_v18  ;;  %s1224_s26 = scalar_lea.vmem %s760_s25, 2048  ;;  %p1229_p5 = scmp.lt.s32.totalorder %s760_s25, %s760_s25 }
 0x153   :  { %942 = vmatpush3.bf16.msra.mxu1 %v283_v18  ;;  %p1225_p4 = scmp.ne.s32.totalorder %s760_s25, %s1224_s26  ;;  %p1230_p6 = scmp.lt.s32.totalorder %s1224_s26, %s1224_s26 }
 0x154   :  { %v284_v23 = vpack.c.bf16 %v247_v20, %v242_v22  ;;  %v928_v24 = vpop.f32.mrb[10].mxu0 }
 0x155   :  { %v257_v25 = vadd.f32 %v928_v24, %v773_v62  ;;  %v251_v26 = vpop.f32.mrb[11].mxu0  ;;  %p1231_p7 = por %p1230_p6, %p1229_p5 }
 0x156   :  { %v252_v27 = vadd.f32 %v773_v62, %v251_v26  ;;  %943 = vmatprep.subr.bf16.mxu1 %v284_v23 }
 0x157   :  { %944 = vmatpush3.bf16.msra.mxu1 %v284_v23  ;;  %p1232_p8 = pnand %p1231_p7, %p1225_p4 }
 0x158   :  { %v285_v28 = vpack.c.bf16 %v257_v25, %v252_v27  ;;  %v931_v29 = vpop.f32.mrb[12].mxu0 }
 0x159   :  { %v267_v30 = vadd.f32 %v931_v29, %v773_v62  ;;  %v261_v31 = vpop.f32.mrb[13].mxu0 }
 0x15a   :  { %v262_v32 = vadd.f32 %v773_v62, %v261_v31  ;;  %945 = vmatprep.subr.bf16.mxu1 %v285_v28 }
 0x15b   :  { %946 = vmatpush3.bf16.msra.mxu1 %v285_v28 }
 0x15c   :  { %v286_v33 = vpack.c.bf16 %v267_v30, %v262_v32  ;;  %v934_v34 = vpop.f32.mrb[14].mxu0 }
 0x15d   :  { %v277_v35 = vadd.f32 %v934_v34, %v773_v62  ;;  %v271_v36 = vpop.f32.mrb[15].mxu0 }
 0x15e   :  { %v272_v37 = vadd.f32 %v773_v62, %v271_v36  ;;  %947 = vmatprep.subr.bf16.mxu1 %v286_v33 }
 0x15f   :  { %948 = vmatpush3.bf16.msra.mxu1 %v286_v33 }
 0x160   :  { %v287_v38 = vpack.c.bf16 %v277_v35, %v272_v37 }
 0x162   :  { %949 = vmatprep.subr.bf16.mxu1 %v287_v38 }
 0x163   :  { %950 = vmatpush3.bf16.msra.mxu1 %v287_v38 }
 0x166   :  { %952 = vmatmul.mubr.bf16.vlgmr.msra.gmra.mrb[0].mxu1 %v1368_v39 }
 0x167   :  { %955 = vmatprep.mubr.bf16.mxu1 %v1370_v41 }
 0x16e   :  { %956 = vmatmul.mubr.bf16.gmra.mrb[4].mxu1 %v1374_v42 }
 0x16f   :  { %959 = vmatprep.mubr.bf16.mxu1 %v1376_v43 }
 0x176   :  { %960 = vmatmul.mubr.bf16.gmra.mrb[8].mxu1 %v1380_v44 }
 0x177   :  { %963 = vmatprep.mubr.bf16.mxu1 %v1382_v45 }
 0x17e   :  { %964 = vmatmul.mubr.bf16.gmra.mrb[12].mxu1 %v1386_v46 }
 0x17f   :  { %1039 = vmatprep.mubr.bf16.mxu1 %v1362_v40 }
 0x239   :  { %v953_v50 = vpop.f32.mrb[0].mxu1 }
 0x23a   :  { %v370_v51 = vpop.f32.mrb[1].mxu1  ;;  %v435_v56 = vmax.f32 %v953_v50, 0.0 }
 0x23b   :  { %v433_v52 = vmax.f32 %v370_v51, 0.0  ;;  %v954_v53 = vpop.f32.mrb[2].mxu1 }
 0x23c   :  { %v373_v54 = vpop.f32.mrb[3].mxu1  ;;  %v436_v57 = vmax.f32 %v954_v53, 0.0 }
 0x23d   :  { %v434_v55 = vmax.f32 %v373_v54, 0.0  ;;  %999 = vmatprep.mubr.f32.mxu0 %v433_v52 }
 0x23f   :  { %1000 = vmatmul.mubr.f32.vlgmr.msra.gmra.mrb[16].mxu0 %v434_v55 }
 0x240   :  { %1002 = vmatprep.mubr.f32.mxu0 %v435_v56 }
 0x241   :  { %v957_v58 = vpop.f32.mrb[4].mxu1 }
 0x242   :  { %v386_v59 = vpop.f32.mrb[5].mxu1  ;;  %v439_v63 = vmax.f32 %v957_v58, 0.0 }
 0x243   :  { %v437_v60 = vmax.f32 %v386_v59, 0.0  ;;  %v958_v40 = vpop.f32.mrb[6].mxu1  ;;  %1003 = vmatmul.mubr.f32.gmra.mrb[18].mxu0 %v436_v57 }
 0x244   :  { %v389_v61 = vpop.f32.mrb[7].mxu1  ;;  %v440_v0 = vmax.f32 %v958_v40, 0.0 }
 0x245   :  { %v438_v62 = vmax.f32 %v389_v61, 0.0  ;;  %1005 = vmatprep.mubr.f32.mxu0 %v437_v60 }
 0x247   :  { %1006 = vmatmul.mubr.f32.gmra.mrb[20].mxu0 %v438_v62 }
 0x248   :  { %1008 = vmatprep.mubr.f32.mxu0 %v439_v63 }
 0x249   :  { %v961_v1 = vpop.f32.mrb[8].mxu1 }
 0x24a   :  { %v402_v2 = vpop.f32.mrb[9].mxu1  ;;  %v443_v7 = vmax.f32 %v961_v1, 0.0 }
 0x24b   :  { %v441_v3 = vmax.f32 %v402_v2, 0.0  ;;  %v962_v4 = vpop.f32.mrb[10].mxu1  ;;  %1009 = vmatmul.mubr.f32.gmra.mrb[22].mxu0 %v440_v0 }
 0x24c   :  { %v405_v5 = vpop.f32.mrb[11].mxu1  ;;  %v444_v8 = vmax.f32 %v962_v4, 0.0 }
 0x24d   :  { %v442_v6 = vmax.f32 %v405_v5, 0.0  ;;  %1011 = vmatprep.mubr.f32.mxu0 %v441_v3 }
 0x24f   :  { %1012 = vmatmul.mubr.f32.gmra.mrb[24].mxu0 %v442_v6 }
 0x250   :  { %1014 = vmatprep.mubr.f32.mxu0 %v443_v7 }
 0x251   :  { %v965_v9 = vpop.f32.mrb[12].mxu1 }
 0x252   :  { %v418_v10 = vpop.f32.mrb[13].mxu1  ;;  %v447_v15 = vmax.f32 %v965_v9, 0.0 }
 0x253   :  { %v445_v11 = vmax.f32 %v418_v10, 0.0  ;;  %v966_v12 = vpop.f32.mrb[14].mxu1  ;;  %1015 = vmatmul.mubr.f32.gmra.mrb[26].mxu0 %v444_v8 }
 0x254   :  { %v421_v13 = vpop.f32.mrb[15].mxu1  ;;  %v448_v16 = vmax.f32 %v966_v12, 0.0 }
 0x255   :  { %v446_v14 = vmax.f32 %v421_v13, 0.0  ;;  %1017 = vmatprep.mubr.f32.mxu0 %v445_v11 }
 0x257   :  { %1018 = vmatmul.mubr.f32.gmra.mrb[28].mxu0 %v446_v14 }
 0x258   :  { %1020 = vmatprep.mubr.f32.mxu0 %v447_v15 }
 0x25b   :  { %1021 = vmatmul.mubr.f32.gmra.mrb[30].mxu0 %v448_v16 }
 0x312   :  { %v1001_v18 = vpop.f32.mrb[16].mxu0 }
 0x313   :  { %v544_v19 = vadd.f32 %v1001_v18, %v782_v17  ;;  %v538_v20 = vpop.f32.mrb[17].mxu0 }
 0x314   :  { %v539_v21 = vadd.f32 %v782_v17, %v538_v20 }
 0x316   :  { %v617_v22 = vpack.c.bf16 %v544_v19, %v539_v21  ;;  %v1004_v23 = vpop.f32.mrb[18].mxu0 }
 0x317   :  { %v554_v24 = vadd.f32 %v1004_v23, %v782_v17  ;;  %v548_v25 = vpop.f32.mrb[19].mxu0 }
 0x318   :  { %v549_v26 = vadd.f32 %v782_v17, %v548_v25  ;;  %1023 = vmatprep.subr.bf16.mxu1 %v617_v22 }
 0x319   :  { %1024 = vmatpush3.bf16.msra.mxu1 %v617_v22 }
 0x31a   :  { %v618_v27 = vpack.c.bf16 %v554_v24, %v549_v26  ;;  %v1007_v28 = vpop.f32.mrb[20].mxu0 }
 0x31b   :  { %v564_v29 = vadd.f32 %v1007_v28, %v782_v17  ;;  %v558_v30 = vpop.f32.mrb[21].mxu0 }
 0x31c   :  { %v559_v31 = vadd.f32 %v782_v17, %v558_v30  ;;  %1025 = vmatprep.subr.bf16.mxu1 %v618_v27 }
 0x31d   :  { %1026 = vmatpush3.bf16.msra.mxu1 %v618_v27 }
 0x31e   :  { %v619_v32 = vpack.c.bf16 %v564_v29, %v559_v31  ;;  %v1010_v33 = vpop.f32.mrb[22].mxu0 }
 0x31f   :  { %v574_v34 = vadd.f32 %v1010_v33, %v782_v17  ;;  %v568_v35 = vpop.f32.mrb[23].mxu0 }
 0x320   :  { %v569_v36 = vadd.f32 %v782_v17, %v568_v35  ;;  %1027 = vmatprep.subr.bf16.mxu1 %v619_v32 }
 0x321   :  { %1028 = vmatpush3.bf16.msra.mxu1 %v619_v32 }
 0x322   :  { %v620_v37 = vpack.c.bf16 %v574_v34, %v569_v36  ;;  %v1013_v38 = vpop.f32.mrb[24].mxu0 }
 0x323   :  { %v584_v47 = vadd.f32 %v1013_v38, %v782_v17  ;;  %v578_v48 = vpop.f32.mrb[25].mxu0 }
 0x324   :  { %v579_v49 = vadd.f32 %v782_v17, %v578_v48  ;;  %1029 = vmatprep.subr.bf16.mxu1 %v620_v37 }
 0x325   :  { %1030 = vmatpush3.bf16.msra.mxu1 %v620_v37 }
 0x326   :  { %v621_v50 = vpack.c.bf16 %v584_v47, %v579_v49  ;;  %v1016_v51 = vpop.f32.mrb[26].mxu0 }
 0x327   :  { %v594_v52 = vadd.f32 %v1016_v51, %v782_v17  ;;  %v588_v53 = vpop.f32.mrb[27].mxu0 }
 0x328   :  { %v589_v54 = vadd.f32 %v782_v17, %v588_v53  ;;  %1031 = vmatprep.subr.bf16.mxu1 %v621_v50 }
 0x329   :  { %1032 = vmatpush3.bf16.msra.mxu1 %v621_v50 }
 0x32a   :  { %v622_v55 = vpack.c.bf16 %v594_v52, %v589_v54  ;;  %v1019_v56 = vpop.f32.mrb[28].mxu0 }
 0x32b   :  { %v604_v57 = vadd.f32 %v1019_v56, %v782_v17  ;;  %v598_v58 = vpop.f32.mrb[29].mxu0 }
 0x32c   :  { %v599_v59 = vadd.f32 %v782_v17, %v598_v58  ;;  %1033 = vmatprep.subr.bf16.mxu1 %v622_v55 }
 0x32d   :  { %1034 = vmatpush3.bf16.msra.mxu1 %v622_v55 }
 0x32e   :  { %v623_v60 = vpack.c.bf16 %v604_v57, %v599_v59  ;;  %v1022_v40 = vpop.f32.mrb[30].mxu0 }
 0x32f   :  { %v614_v61 = vadd.f32 %v1022_v40, %v782_v17  ;;  %v608_v62 = vpop.f32.mrb[31].mxu0 }
 0x330   :  { %v609_v63 = vadd.f32 %v782_v17, %v608_v62  ;;  %1035 = vmatprep.subr.bf16.mxu1 %v623_v60 }
 0x331   :  { %1036 = vmatpush3.bf16.msra.mxu1 %v623_v60 }
 0x332   :  { %v624_v0 = vpack.c.bf16 %v614_v61, %v609_v63 }
 0x334   :  { %1037 = vmatprep.subr.bf16.mxu1 %v624_v0 }
 0x335   :  { %1038 = vmatpush3.bf16.msra.mxu1 %v624_v0 }
 0x338   :  { %1040 = vmatmul.mubr.bf16.vlgmr.msra.gmra.mrb[16].mxu1 %v1368_v39 }
 0x339   :  { %1043 = vmatprep.mubr.bf16.mxu1 %v1370_v41 }
 0x340   :  { %1044 = vmatmul.mubr.bf16.gmra.mrb[20].mxu1 %v1374_v42 }
 0x341   :  { %1047 = vmatprep.mubr.bf16.mxu1 %v1376_v43 }
 0x348   :  { %1048 = vmatmul.mubr.bf16.gmra.mrb[24].mxu1 %v1380_v44 }
 0x349   :  { %1051 = vmatprep.mubr.bf16.mxu1 %v1382_v45 }
 0x350   :  { %1052 = vmatmul.mubr.bf16.gmra.mrb[28].mxu1 %v1386_v46 }
 0x40b   :  { %v1041_v1 = vpop.f32.mrb[16].mxu1 }
 0x40c   :  { %v724_v2 = vmax.f32 %v1041_v1, 0.0  ;;  %v659_v3 = vpop.f32.mrb[17].mxu1 }
 0x40d   :  { %v722_v4 = vmax.f32 %v659_v3, 0.0  ;;  %v1042_v5 = vpop.f32.mrb[18].mxu1 }
 0x40e   :  { %740 = vst [vmem:[#allocation10 + $0x10] sm:$0xff] %v724_v2  ;;  %v725_v6 = vmax.f32 %v1042_v5, 0.0  ;;  %v662_v39 = vpop.f32.mrb[19].mxu1 }
 0x40f   :  { %738 = vst [vmem:[#allocation10] sm:$0xff] %v722_v4  ;;  %v723_v41 = vmax.f32 %v662_v39, 0.0 }
 0x410   :  { %741 = vst [vmem:[#allocation10 + $0x18] sm:$0xff] %v725_v6 }
 0x411   :  { %739 = vst [vmem:[#allocation10 + $0x8] sm:$0xff] %v723_v41 }
 0x413   :  { %v1045_v42 = vpop.f32.mrb[20].mxu1 }
 0x414   :  { %v728_v43 = vmax.f32 %v1045_v42, 0.0  ;;  %v675_v7 = vpop.f32.mrb[21].mxu1 }
 0x415   :  { %v726_v44 = vmax.f32 %v675_v7, 0.0  ;;  %v1046_v8 = vpop.f32.mrb[22].mxu1 }
 0x416   :  { %744 = vst [vmem:[#allocation10 + $0x30] sm:$0xff] %v728_v43  ;;  %v729_v45 = vmax.f32 %v1046_v8, 0.0  ;;  %v678_v46 = vpop.f32.mrb[23].mxu1 }
 0x417   :  { %742 = vst [vmem:[#allocation10 + $0x20] sm:$0xff] %v726_v44  ;;  %v727_v9 = vmax.f32 %v678_v46, 0.0 }
 0x418   :  { %745 = vst [vmem:[#allocation10 + $0x38] sm:$0xff] %v729_v45 }
 0x419   :  { %743 = vst [vmem:[#allocation10 + $0x28] sm:$0xff] %v727_v9 }
 0x41b   :  { %v1049_v10 = vpop.f32.mrb[24].mxu1 }
 0x41c   :  { %v732_v11 = vmax.f32 %v1049_v10, 0.0  ;;  %v691_v12 = vpop.f32.mrb[25].mxu1 }
 0x41d   :  { %v730_v13 = vmax.f32 %v691_v12, 0.0  ;;  %v1050_v14 = vpop.f32.mrb[26].mxu1 }
 0x41e   :  { %748 = vst [vmem:[#allocation10 + $0x50] sm:$0xff] %v732_v11  ;;  %v733_v15 = vmax.f32 %v1050_v14, 0.0  ;;  %v694_v16 = vpop.f32.mrb[27].mxu1 }
 0x41f   :  { %746 = vst [vmem:[#allocation10 + $0x40] sm:$0xff] %v730_v13  ;;  %v731_v17 = vmax.f32 %v694_v16, 0.0 }
 0x420   :  { %749 = vst [vmem:[#allocation10 + $0x58] sm:$0xff] %v733_v15 }
 0x421   :  { %747 = vst [vmem:[#allocation10 + $0x48] sm:$0xff] %v731_v17 }
 0x423   :  { %v1053_v18 = vpop.f32.mrb[28].mxu1 }
 0x424   :  { %v736_v19 = vmax.f32 %v1053_v18, 0.0  ;;  %v707_v20 = vpop.f32.mrb[29].mxu1 }
 0x425   :  { %v734_v21 = vmax.f32 %v707_v20, 0.0  ;;  %v1054_v22 = vpop.f32.mrb[30].mxu1 }
 0x426   :  { %752 = vst [vmem:[#allocation10 + $0x70] sm:$0xff] %v736_v19  ;;  %v737_v23 = vmax.f32 %v1054_v22, 0.0  ;;  %v710_v24 = vpop.f32.mrb[31].mxu1 }
 0x427   :  { %750 = vst [vmem:[#allocation10 + $0x60] sm:$0xff] %v734_v21  ;;  %v735_v25 = vmax.f32 %v710_v24, 0.0 }
 0x428   :  { %753 = vst [vmem:[#allocation10 + $0x78] sm:$0xff] %v737_v23 }
 0x429   :  { %751 = vst [vmem:[#allocation10 + $0x68] sm:$0xff] %v735_v25 }
 0x42a   :  { %1235 = shalt.err (!%p1232_p8)
}
 0x42b   :  { %s1236_s29 = scalar_lea.hbm %s1421_s6, 2048 }
 0x42c   :  { %p1237_p9 = scmp.ne.s32.totalorder %s1421_s6, %s1236_s29  ;;  %p1240_p10 = scmp.lt.u32.totalorder %s1236_s29, %s1421_s6 }
 0x42e   :  { %p1242_p11 = pnand %p1240_p10, %p1237_p9 }
 0x430   :  { %1245 = shalt.err (!%p1242_p11)
}
 0x431   :  { %765 = dma.vmem_to_hbm [thread:$0]  %s760_s25, 2048, %s1421_s6, [#allocation4], %s1255_s7, %s1255_s7, %s1256_s8  }
 0x432   :  { %1252 = dma.done.wait [#allocation4], 2048  }
 0x433   :  { %1253 = vsyncadd [#allocation4], 4294965248 }
 0x434   :  { %769 = vsyncpa [#allocation3], 1 }
 0x435   :  { %770 = vsyncpa [#allocation6], 1 }
 0x436   :  { %771 = vsyncpa [#allocation9], 1 }
 0x437   :  { %772 = vsyncpa [#allocation4], 1 }

</bundles_post_ra>
